<compile_context>
chip_gen: v7x
topology: tpu7x:2x2x1
jax: 0.10.0
libtpu: 0.0.40
codegen_flags: <defaults>
</compile_context>

<pallas_src>
import jax
import jax.numpy as jnp
from jax import lax
from jax.experimental import pallas as pl
from jax.experimental.pallas import tpu as pltpu


def _bert_pooler_kernel(x_ref, w_ref, b_ref, o_ref):
    # x_ref: (B, H)   first-token activations (resident across the N grid)
    # w_ref: (TN, H)  weight tile, torch (out, in) layout, already in compute dtype
    # b_ref: (1, TN)  bias tile (few KiB; DMA hidden under the (TN, H) weight stream)
    # o_ref: (B, TN)  output tile (lane-dense)
    #
    # Contract the in-feature axis of BOTH operands: y = x @ W^T with no explicit
    # transpose.
    # TODO(synk): verify via pl.lower_as_mlir that no per-tile vxpose/relayout is
    # inserted for the (TN, H) operand; if one appears, store W pre-transposed
    # (in, out) at weight-load time and contract (((1,), (0,))) instead.
    y = lax.dot_general(
        x_ref[...], w_ref[...],
        dimension_numbers=(((1,), (1,)), ((), ())),
        preferred_element_type=jnp.float32,
    )
    y = y + b_ref[...].astype(jnp.float32)          # (1, TN) -> broadcast over B
    o_ref[...] = jnp.tanh(y).astype(o_ref.dtype)


def _pick_tile_n(H, w_itemsize):
    """Out-feature tile width.

    Prefer two grid steps (TN = H/2): fewest steps while still letting the
    "parallel" axis shard across both v7x TensorCores.  Shrink by powers of two
    (keeping TN a multiple of 128) only if the double-buffered weight tile would
    blow a conservative scoped-VMEM budget (safe on v5e/v6e/v7x defaults).
    """
    budget = 12 << 20  # bytes allowed for the double-buffered weight tile
    if H % 256 == 0:
        tn = H // 2
        while tn % 256 == 0 and 2 * tn * H * w_itemsize > budget:
            tn //= 2
        if tn % 128 == 0 and 2 * tn * H * w_itemsize <= budget:
            return tn
    for tn in (512, 384, 256, 128):
        if H % tn == 0 and 2 * tn * H * w_itemsize <= budget:
            return tn
    return H


def bert_pooler(hidden_states, weight, bias, *, compute_dtype=None):
    """BertPooler forward: tanh(hidden_states[:, 0] @ weight.T + bias).

    hidden_states: (B, S, H); weight: (H, H) torch nn.Linear (out, in) layout;
    bias: (H,).  Returns (B, H) in hidden_states.dtype.

    The kernel is weight-HBM-bandwidth bound.  To halve the weight stream,
    pre-cast the weight once at load time (weight.astype(jnp.bfloat16)) and/or
    pass compute_dtype=jnp.bfloat16: the cast is applied *before* the
    pallas_call, so HBM bytes (and wall time) roughly halve.  Accumulation,
    bias add and tanh stay in f32; re-validate with ~1e-2 tolerance for bf16.
    """
    B, S, H = hidden_states.shape
    assert weight.shape == (H, H)
    assert bias.shape == (H,)
    out_dtype = hidden_states.dtype
    if compute_dtype is None:
        compute_dtype = out_dtype

    # First-token select + one-time casts in the wrapper: the kernel then
    # streams weight bytes already in the compute dtype.
    x = hidden_states[:, 0, :].astype(compute_dtype)
    w = weight if weight.dtype == compute_dtype else weight.astype(compute_dtype)
    bias2d = bias.reshape(1, H)

    w_itemsize = jnp.dtype(compute_dtype).itemsize
    TN = _pick_tile_n(H, w_itemsize)
    grid_n = H // TN
    assert TN * grid_n == H

    out = pl.pallas_call(
        _bert_pooler_kernel,
        out_shape=jax.ShapeDtypeStruct((B, H), out_dtype),
        grid_spec=pltpu.PrefetchScalarGridSpec(
            num_scalar_prefetch=0,
            grid=(grid_n,),
            in_specs=[
                # Activations: tiny, full-extent block, same block index every
                # step -> stays resident (single DMA), no batch padding needed.
                pl.BlockSpec((B, H), lambda j: (0, 0)),
                # Weight: tiled along out-features; double-buffered by Pallas so
                # the dominant HBM stream overlaps MXU work.
                pl.BlockSpec((TN, H), lambda j: (j, 0)),
                # Bias tile.
                pl.BlockSpec((1, TN), lambda j: (0, j)),
            ],
            out_specs=pl.BlockSpec((B, TN), lambda j: (0, j)),
        ),
        compiler_params=pltpu.CompilerParams(
            # Independent out-feature tiles: shards across both v7x TensorCores;
            # harmless no-op on single-TC v5e/v6e.
            dimension_semantics=("parallel",),
        ),
        cost_estimate=pl.CostEstimate(
            flops=2 * B * H * H,
            transcendentals=B * H,
            bytes_accessed=(H * H * w_itemsize
                            + B * H * w_itemsize
                            + B * H * jnp.dtype(out_dtype).itemsize
                            + H * jnp.dtype(bias.dtype).itemsize),
        ),
    )(x, w, bias2d)

    return out


def bert_pooler_ref(hidden_states, weight, bias):
    x = hidden_states[:, 0]
    return jnp.tanh(x @ weight.T + bias)


if __name__ == "__main__":
    B, S, H = 2, 8, 32  # small BERT-like config: batch=2, seq=8, hidden=32

    key = jax.random.PRNGKey(0)
    k_hs, k_w, k_b = jax.random.split(key, 3)

    hidden_states = jax.random.normal(k_hs, (B, S, H), dtype=jnp.float32)
    # Deterministic synthetic "Linear" params (torch layout: (out, in)).
    weight = jax.random.normal(k_w, (H, H), dtype=jnp.float32) * 0.02
    bias = jax.random.normal(k_b, (H,), dtype=jnp.float32) * 0.02

    # jit the wrapper so the first-token slice / reshape fuse with the launch
    # instead of being separate dispatches.
    pooler = jax.jit(bert_pooler)
    out = jax.block_until_ready(pooler(hidden_states, weight, bias))

    ref = bert_pooler_ref(hidden_states, weight, bias)
    assert out.shape == (B, H)
    assert jnp.allclose(out, ref, atol=1e-5, rtol=1e-5)

    print("KERNEL_OK")
</pallas_src>

<mosaic_0001>
module attributes {stable_mosaic.version = 11 : i64} {
  func.func @_bert_pooler_kernel(%arg0: i32, %arg1: memref<2x32xf32, #tpu.memory_space<vmem>>, %arg2: memref<32x32xf32, #tpu.memory_space<vmem>>, %arg3: memref<1x32xf32, #tpu.memory_space<vmem>>, %arg4: memref<2x32xf32, #tpu.memory_space<vmem>>) attributes {dimension_semantics = [#tpu.dimension_semantics<parallel>], iteration_bounds = array<i64: 1>, scalar_prefetch = 0 : i64, scratch_operands = 0 : i64, tpu.core_type = #tpu.core_type<tc>, window_params = [{pipeline_mode = #tpu.pipeline_mode<synchronous>, transform_indices = @transform_0, window_bounds = array<i64: 2, 32>}, {transform_indices = @transform_1, window_bounds = array<i64: 32, 32>}, {transform_indices = @transform_2, window_bounds = array<i64: 1, 32>}, {transform_indices = @transform_3, window_bounds = array<i64: 2, 32>}]} {
    %c0 = arith.constant 0 : index
    %c0_0 = arith.constant 0 : index
    %0 = vector.load %arg1[%c0, %c0_0] : memref<2x32xf32, #tpu.memory_space<vmem>>, vector<2x32xf32>
    %c0_1 = arith.constant 0 : index
    %c0_2 = arith.constant 0 : index
    %1 = vector.load %arg2[%c0_1, %c0_2] : memref<32x32xf32, #tpu.memory_space<vmem>>, vector<32x32xf32>
    %cst = arith.constant dense<0.000000e+00> : vector<2x32xf32>
    %2 = tpu.matmul %0, %1, %cst {dimension_numbers = #tpu.dot_dimension_numbers<[1], [1], [0], [0], [0, 0, 1, 0], [], []>} : vector<2x32xf32>, vector<32x32xf32>, vector<2x32xf32> -> vector<2x32xf32>
    %c0_3 = arith.constant 0 : index
    %c0_4 = arith.constant 0 : index
    %3 = vector.load %arg3[%c0_3, %c0_4] : memref<1x32xf32, #tpu.memory_space<vmem>>, vector<1x32xf32>
    %4 = vector.broadcast %3 : vector<1x32xf32> to vector<2x32xf32>
    %5 = arith.addf %2, %4 : vector<2x32xf32>
    %6 = math.tanh %5 : vector<2x32xf32>
    %c0_5 = arith.constant 0 : index
    %c0_6 = arith.constant 0 : index
    %7 = vector.load %arg4[%c0_5, %c0_6] : memref<2x32xf32, #tpu.memory_space<vmem>>, vector<2x32xf32>
    tpu.vector_store %arg4[%c0_5, %c0_6], %6 {strides = array<i32>} : memref<2x32xf32, #tpu.memory_space<vmem>>, vector<2x32xf32>,
    return
  }
  func.func @transform_0(%arg0: i32) -> (i32, i32) {
    %c0_i32 = arith.constant 0 : i32
    %c0_i32_0 = arith.constant 0 : i32
    %c0_i32_1 = arith.constant 0 : i32
    return %c0_i32, %c0_i32_0 : i32, i32
  }
  func.func @transform_1(%arg0: i32) -> (i32, i32) {
    %c0_i32 = arith.constant 0 : i32
    %c0_i32_0 = arith.constant 0 : i32
    return %arg0, %c0_i32 : i32, i32
  }
  func.func @transform_2(%arg0: i32) -> (i32, i32) {
    %c0_i32 = arith.constant 0 : i32
    %c0_i32_0 = arith.constant 0 : i32
    return %c0_i32, %arg0 : i32, i32
  }
  func.func @transform_3(%arg0: i32) -> (i32, i32) {
    %c0_i32 = arith.constant 0 : i32
    %c0_i32_0 = arith.constant 0 : i32
    return %c0_i32, %arg0 : i32, i32
  }
}

</mosaic_0001>

<bundles_post_ra>
// kernel: bert_pooler.1
= control target key start
LH: loop header
LB: loop body
LE: loop exit
PB: predicated region body
PF: predicated region fallthrough
CT: control target
= control target key end

     0   :  { %8 = vsyncpa [#allocation3], 0  ;;  %s289_s0 = inlined_call_operand.vmem [shape: f32[2,32], index: 0, kind: input, shape index: {}]   ;;  %s290_s1 = inlined_call_operand.hbm [shape: f32[32,32], index: 1, kind: input, shape index: {}]   ;;  %s291_s2 = inlined_call_operand.vmem [shape: f32[1,32], index: 2, kind: input, shape index: {}]   ;;  %s292_s3 = inlined_call_operand.hbm [shape: f32[2,32], index: 3, kind: output, shape index: {}]  }
   0x1   :  { %9 = vsyncpa [#allocation4], 0  ;;  %s232_s12 = smov [#allocation2]   ;;  %s184_s16 = scalar_lea.hbm %s290_s1, 512 }
   0x2   :  { %s17_s13 = sshll.u32 %s232_s12, 4  ;;  %p185_p0 = scmp.ne.s32.totalorder %s290_s1, %s184_s16  ;;  %s18_s13 = int_to_ptr.vmem [resolvable:$true] %s17_s13 }
   0x3   :  { %p188_p1 = scmp.lt.u32.totalorder %s184_s16, %s290_s1 }
   0x5   :  { %p190_p2 = pnand %p188_p1, %p185_p0 }
   0x7   :  { %193 = shalt.err (!%p190_p2)
}
   0x8   :  { %s194_s21 = scalar_lea.vmem %s18_s13, 512  ;;  %p199_p4 = scmp.lt.s32.totalorder %s18_s13, %s18_s13 }
   0x9   :  { %p195_p3 = scmp.ne.s32.totalorder %s18_s13, %s194_s21  ;;  %p200_p5 = scmp.lt.s32.totalorder %s194_s21, %s194_s21 }
   0xb   :  { %p201_p6 = por %p200_p5, %p199_p4 }
   0xd   :  { %p202_p7 = pnand %p201_p6, %p195_p3 }
   0xf   :  { %205 = shalt.err (!%p202_p7)
}
  0x10   :  { %s233_s22 = smov 128   ;;  %s234_s23 = smov 8  }
  0x11   :  { %23 = dma.hbm_to_vmem [thread:$0]  %s290_s1, 512, %s18_s13, [#allocation3], %s233_s22, %s233_s22, %s234_s23  }
  0x12   :  { %228 = dma.done.wait [#allocation3], 512  }
  0x13   :  { %229 = vsyncadd [#allocation3], 4294966784  ;;  %v235_v0 = vmov 0.0|0.0   ;;  %vm236_vm0 = vmmov 0   ;;  %v237_v1 = vmov 0.0   ;;  %vm41_vm1 = vcmask 261120  }
  0x14   :  { %167 = vmatprep.subr.bf16.mxu0 %v235_v0  ;;  %164 = vmatprep.mubr.msk.f32.mxu0 %vm236_vm0, %v237_v1  ;;  %v30_v2 = vld [vmem:[#allocation2] sm:$0xff]  ;;  %v31_v3 = vld [vmem:[#allocation2 + $0x8] sm:$0xff]  ;;  %vm169_vm2 = vmpackc.low %vm41_vm1, %vm41_vm1  ;;  %s238_s29 = smov [#allocation5]   ;;  %vm128_vm3 = vcmask 254976  }
  0x15   :  { %v168_v4 = vpack.c.bf16 %v31_v3, %v30_v2  ;;  %v32_v5 = vld [vmem:[#allocation2 + $0x10] sm:$0xff]  ;;  %v33_v6 = vld [vmem:[#allocation2 + $0x18] sm:$0xff]  ;;  %v29_v8 = vld [vmem:[%s289_s0] sm:$0x3]  ;;  %s136_s30 = sshll.u32 %s238_s29, 4  ;;  %s137_s30 = int_to_ptr.vmem [resolvable:$true] %s136_s30 }
  0x16   :  { %v172_v7 = vpack.c.bf16 %v33_v6, %v32_v5  ;;  %v145_v9 = vld [vmem:[%s291_s2] ss:$0 sm:$0xff]  ;;  %s206_s4 = scalar_lea.vmem %s137_s30, 32  ;;  %p211_p9 = scmp.lt.s32.totalorder %s137_s30, %s137_s30 }
  0x17   :  { %170 = vmatpush3.bf16.xpose.msk.msra.mxu0 %vm169_vm2, %v168_v4  ;;  %p207_p8 = scmp.ne.s32.totalorder %s137_s30, %s206_s4  ;;  %p212_p10 = scmp.lt.s32.totalorder %s206_s4, %s206_s4 }
  0x18   :  { %171 = vmatprep.subr.bf16.mxu0 %v235_v0 }
  0x19   :  { %p213_p11 = por %p212_p10, %p211_p9 }
  0x1b   :  { %p214_p12 = pnand %p213_p11, %p207_p8 }
  0x1f   :  { %174 = vmatpush3.bf16.xpose.msk.msra.mxu0 %vm169_vm2, %v172_v7 }
  0x26   :  { %165 = vmatmul.mubr.msk.f32.vlgmr.msra.gmra.mrb[0].mxu0 %vm41_vm1, %v29_v8 }
  0xf9   :  { %v123_v10 = vpop.f32.mrb[0].mxu0 }
  0xfa   :  { %v124_v11 = vadd.f32 %v145_v9, %v123_v10  ;;  %v166_v12 = vpop.f32.mrb[1].mxu0 }
  0xfc   :  { %182 = vtanh.f32 %v124_v11 }
 0x106   :  { %v183_v13 = vpop.eup %182 }
 0x107   :  { %129 = vst.msk [vmem:[#allocation5] sm:$0x3] %vm128_vm3, %v183_v13 }
 0x108   :  { %217 = shalt.err (!%p214_p12)
}
 0x109   :  { %s218_s2 = scalar_lea.hbm %s292_s3, 32 }
 0x10a   :  { %p219_p13 = scmp.ne.s32.totalorder %s292_s3, %s218_s2  ;;  %p222_p0 = scmp.lt.u32.totalorder %s218_s2, %s292_s3 }
 0x10c   :  { %p224_p1 = pnand %p222_p0, %p219_p13 }
 0x10e   :  { %227 = shalt.err (!%p224_p1)
}
 0x10f   :  { %139 = dma.vmem_to_hbm [thread:$0]  %s137_s30, 32, %s292_s3, [#allocation4]  }
 0x110   :  { %230 = dma.done.wait [#allocation4], 32  }
 0x111   :  { %231 = vsyncadd [#allocation4], 4294967264 }
 0x112   :  { %143 = vsyncpa [#allocation3], 1 }
 0x113   :  { %144 = vsyncpa [#allocation4], 1 }

</bundles_post_ra>
